<compile_context>
chip_gen: v5e
topology: v5e:2x2
jax: 0.10.0
libtpu: 0.0.40
codegen_flags: <defaults>
</compile_context>

<pallas_src>
import functools

import jax
import jax.numpy as jnp
from jax.experimental import pallas as pl
from jax.experimental.pallas import tpu as pltpu


LANE = 128   # lane width: feature dims padded to multiples of this


def _round_up(n, m):
    return ((n + m - 1) // m) * m


def _physical_vmem_bytes():
    """Best-effort physical VMEM per core; conservative 64 MiB (v7x) if unknown."""
    try:
        info = pltpu.get_tpu_info()
        cap = getattr(info, "vmem_capacity_bytes", None)
        if cap:
            return int(cap)
    except Exception:
        pass
    return 64 << 20


def _select_batch_tile(B):
    """Batch tile (rows per grid step); always a multiple of 8 (sublanes).

    Large batches: 256 rows fill the 256-wide MXU M dim on v6e/v7x, amortize
    the ~0.35us per-step overhead, and keep >= 2 grid steps so the 'parallel'
    batch axis can shard across v7x's two TensorCores.
    Small/medium batches: at most two minimally-padded tiles (two steps when
    splitting is worthwhile for v7x megacore, one tiny step otherwise).
    """
    if B <= 16:
        return _round_up(max(B, 8), 8)
    if B <= 512:
        return _round_up((B + 1) // 2, 8)
    return 256  # consider 512 on v6e for very large batches if VMEM allows


def _pick_tile(dim_pad, cap=512):
    """Largest of (cap, 256, 128) dividing a lane-padded dim."""
    for t in (cap, 256, 128):
        if t <= dim_pad and dim_pad % t == 0:
            return t
    return dim_pad


def _pad_params(params):
    """Zero-pad each (W[in,out], b[out]) to lane multiples; W -> bf16, b -> f32 (1, out_pad).

    Zero padding is exact: zero weight rows/cols + zero bias + ReLU(0)=0.
    """
    padded = []
    for w, b in params:
        d_in, d_out = w.shape
        in_p, out_p = _round_up(d_in, LANE), _round_up(d_out, LANE)
        w_p = jnp.zeros((in_p, out_p), jnp.float32).at[:d_in, :d_out].set(w)
        b_p = jnp.zeros((1, out_p), jnp.float32).at[0, :d_out].set(b)
        padded.append((w_p.astype(jnp.bfloat16), b_p))
    return padded


# ----------------------------------------------------------------------------
# Fused path: whole 7-layer chain in one pallas_call, weights VMEM-resident.
# ----------------------------------------------------------------------------

def _mlp_kernel(x_ref,
                w1_ref, b1_ref, w2_ref, b2_ref, w3_ref, b3_ref,
                w4_ref, b4_ref, w5_ref, b5_ref, w6_ref, b6_ref,
                w7_ref, b7_ref,
                out_ref):
    """One (TB, in_pad) batch tile through all 7 layers, fully in VMEM."""

    def linear(h, w_ref, b_ref, relu):
        # bf16 x bf16 operands, f32 MXU accumulation.
        y = jnp.dot(h, w_ref[...], preferred_element_type=jnp.float32)
        y = y + b_ref[...]                 # f32 epilogue (v5e has no bf16 VPU)
        if relu:
            # Single cast after the ReLU: the live inter-layer activation and
            # the next dot's operand are bf16 (halves vreg/VMEM pressure).
            y = jnp.maximum(y, 0.0).astype(jnp.bfloat16)
        return y

    h = x_ref[...]                                     # bf16 (TB, in_pad)
    h = linear(h, w1_ref, b1_ref, relu=True)
    h = linear(h, w2_ref, b2_ref, relu=True)
    h = linear(h, w3_ref, b3_ref, relu=True)
    h = linear(h, w4_ref, b4_ref, relu=True)
    h = linear(h, w5_ref, b5_ref, relu=True)
    h = linear(h, w6_ref, b6_ref, relu=True)
    h = linear(h, w7_ref, b7_ref, relu=False)          # raw logits, f32
    out_ref[...] = h.astype(out_ref.dtype)


def _resident_spec(shape, single_buffer):
    # Constant block index across the grid -> the block stays VMEM-resident
    # (never re-DMA'd).  Single buffering halves its footprint vs the default
    # double buffering.
    if single_buffer:
        return pl.BlockSpec(shape, lambda i: (0, 0),
                            pipeline_mode=pl.Buffered(1))
    return pl.BlockSpec(shape, lambda i: (0, 0))


def _fused_forward(x_p, padded, tb, vmem_limit, single_buffer_weights):
    B_pad, in_pad = x_p.shape
    out_pad = padded[-1][0].shape[1]
    grid = (B_pad // tb,)

    flat_args = [x_p]
    in_specs = [pl.BlockSpec((tb, in_pad), lambda i: (i, 0))]
    for w_p, b_p in padded:
        flat_args.append(w_p)
        in_specs.append(_resident_spec(w_p.shape, single_buffer_weights))
        flat_args.append(b_p)
        in_specs.append(_resident_spec(b_p.shape, single_buffer_weights))

    out_shape = jax.ShapeDtypeStruct((B_pad, out_pad), jnp.float32)
    out_spec = pl.BlockSpec((tb, out_pad), lambda i: (i, 0))

    flops = 2 * B_pad * sum(w.shape[0] * w.shape[1] for w, _ in padded)
    bytes_accessed = (x_p.size * 2 + B_pad * out_pad * 4
                      + sum(w.size * 2 + b.size * 4 for w, b in padded))
    cost = pl.CostEstimate(flops=flops, transcendentals=0,
                           bytes_accessed=bytes_accessed)

    return pl.pallas_call(
        _mlp_kernel,
        out_shape=out_shape,
        grid=grid,
        in_specs=in_specs,
        out_specs=out_spec,
        compiler_params=pltpu.CompilerParams(
            dimension_semantics=("parallel",),
            vmem_limit_bytes=int(vmem_limit)),
        cost_estimate=cost,
    )(*flat_args)


# ----------------------------------------------------------------------------
# Streaming fallback: per-layer tiled matmul (weights streamed from HBM).
# Used when the resident weights would not fit ~half of physical VMEM
# (e.g. large hidden sizes on v7x's 64 MiB).
# ----------------------------------------------------------------------------

def _streamed_linear_kernel(x_ref, w_ref, b_ref, o_ref, acc_ref, *, relu):
    @pl.when(pl.program_id(2) == 0)
    def _init():
        acc_ref[...] = jnp.zeros_like(acc_ref)

    acc_ref[...] += jnp.dot(x_ref[...], w_ref[...],
                            preferred_element_type=jnp.float32)

    @pl.when(pl.program_id(2) == pl.num_programs(2) - 1)
    def _finalize():
        y = acc_ref[...] + b_ref[...]
        if relu:
            y = jnp.maximum(y, 0.0)
        o_ref[...] = y.astype(o_ref.dtype)


def _streamed_forward(x_p, padded, tb, vmem_limit):
    M = x_p.shape[0]
    n_layers = len(padded)
    h = x_p
    for li, (w_p, b_p) in enumerate(padded):
        relu = li < n_layers - 1
        K, N = w_p.shape
        tm, tk, tn = tb, _pick_tile(K), _pick_tile(N)
        out_dtype = jnp.bfloat16 if relu else jnp.float32
        h = pl.pallas_call(
            functools.partial(_streamed_linear_kernel, relu=relu),
            out_shape=jax.ShapeDtypeStruct((M, N), out_dtype),
            grid=(M // tm, N // tn, K // tk),
            in_specs=[
                pl.BlockSpec((tm, tk), lambda i, j, k: (i, k)),
                # On v7x, pipeline_mode=pl.Buffered(3) on this streamed weight
                # spec can hide HBM latency behind back-to-back dots.
                pl.BlockSpec((tk, tn), lambda i, j, k: (k, j)),
                pl.BlockSpec((1, tn), lambda i, j, k: (0, j)),
            ],
            out_specs=pl.BlockSpec((tm, tn), lambda i, j, k: (i, j)),
            scratch_shapes=[pltpu.VMEM((tm, tn), jnp.float32)],
            compiler_params=pltpu.CompilerParams(
                dimension_semantics=("parallel", "parallel", "arbitrary"),
                vmem_limit_bytes=int(vmem_limit)),
        )(h, w_p, b_p)
    return h


# ----------------------------------------------------------------------------
# Public wrapper.
# ----------------------------------------------------------------------------

def mlp_forward(x, params, *, force_streaming=False):
    """x: [B, input_size] f32.  params: list of (W[in,out] f32, b[out] f32).

    Returns logits [B, num_classes] f32 (dropout = identity, no softmax).
    """
    B, d_in = x.shape
    num_classes = params[-1][0].shape[1]

    padded = _pad_params(params)
    in_pad = padded[0][0].shape[0]
    out_pad = padded[-1][0].shape[1]

    tb = _select_batch_tile(B)
    B_pad = _round_up(B, tb)

    # Pad / cast the batch only when needed (already-aligned inputs cost only
    # the bf16 cast, not an extra zero-pad pass over HBM).
    if B_pad == B and in_pad == d_in:
        x_p = x.astype(jnp.bfloat16)
    else:
        x_p = jnp.zeros((B_pad, in_pad), jnp.bfloat16).at[:B, :d_in].set(
            x.astype(jnp.bfloat16))

    # VMEM budget: single-buffered resident weights + double-buffered IO tiles
    # + live f32 intermediates; capped at ~85% of physical VMEM.
    phys_vmem = _physical_vmem_bytes()
    weight_bytes = sum(w.size * 2 + b.size * 4 for w, b in padded)
    max_width = max(in_pad, max(w.shape[1] for w, _ in padded))
    footprint = (weight_bytes
                 + 2 * tb * in_pad * 2     # double-buffered bf16 input tile
                 + 2 * tb * out_pad * 4    # double-buffered f32 output tile
                 + 3 * tb * max_width * 4)  # live f32 dot results / operands
    vmem_cap = int(0.85 * phys_vmem)
    vmem_limit = min(vmem_cap, max(2 * footprint, 32 << 20))

    use_streaming = force_streaming or (weight_bytes > phys_vmem // 2)

    if use_streaming:
        out_full = _streamed_forward(x_p, padded, tb, vmem_cap)
    else:
        try:
            out_full = _fused_forward(x_p, padded, tb, vmem_limit,
                                      single_buffer_weights=True)
        except Exception:
            # pl.Buffered(1) unsupported by this jax/jaxlib combination:
            # rerun with default (double) buffering — correct, just 2x weight
            # VMEM footprint.
            out_full = _fused_forward(x_p, padded, tb, vmem_limit,
                                      single_buffer_weights=False)

    if B_pad == B and out_pad == num_classes:
        return out_full
    return out_full[:B, :num_classes]


# ----------------------------------------------------------------------------
# Parameter init + references.
# ----------------------------------------------------------------------------

def init_linear_params(key, in_features, out_features):
    """Mimics torch.nn.Linear init: U(-1/sqrt(in), 1/sqrt(in)); W stored [in,out]."""
    k_w, k_b = jax.random.split(key)
    bound = 1.0 / jnp.sqrt(jnp.float32(in_features))
    w = jax.random.uniform(k_w, (in_features, out_features),
                           minval=-bound, maxval=bound, dtype=jnp.float32)
    b = jax.random.uniform(k_b, (out_features,),
                           minval=-bound, maxval=bound, dtype=jnp.float32)
    return w, b


def build_mlp_params(key, input_size, f1, f2, f3, f4, f5, f6, num_classes):
    sizes = [input_size, f1, f2, f3, f4, f5, f6, num_classes]
    keys = jax.random.split(key, len(sizes) - 1)
    return [init_linear_params(k, sizes[i], sizes[i + 1])
            for i, k in enumerate(keys)]


def mlp_reference_bf16(x, params):
    """Plain-JAX reference with the kernel's exact bf16-operand / f32-accumulate math."""
    h = x.astype(jnp.bfloat16)
    out = None
    for i, (w, b) in enumerate(params):
        y = jnp.dot(h, w.astype(jnp.bfloat16),
                    preferred_element_type=jnp.float32) + b
        if i < len(params) - 1:
            h = jnp.maximum(y, 0.0).astype(jnp.bfloat16)
        else:
            out = y
    return out


def mlp_reference_f32(x, params):
    h = x
    for i, (w, b) in enumerate(params):
        h = h @ w + b
        if i < len(params) - 1:
            h = jnp.maximum(h, 0.0)
    return h


if __name__ == "__main__":
    # Small, MLP-consistent shapes.
    batch = 8
    input_size = 32
    f1, f2, f3, f4, f5, f6 = 64, 64, 48, 48, 32, 32
    num_classes = 8

    key = jax.random.PRNGKey(0)
    k_x, k_p = jax.random.split(key)

    x = jax.random.normal(k_x, (batch, input_size), dtype=jnp.float32)
    params = build_mlp_params(k_p, input_size, f1, f2, f3, f4, f5, f6, num_classes)

    ref_bf16 = mlp_reference_bf16(x, params)
    ref_f32 = mlp_reference_f32(x, params)

    # Fused (VMEM-resident weights) path.
    out = jax.block_until_ready(mlp_forward(x, params))
    assert out.shape == (batch, num_classes)
    assert jnp.allclose(out, ref_bf16, atol=1e-2, rtol=1e-2), "fused: mismatch vs bf16 reference"
    assert jnp.allclose(out, ref_f32, atol=5e-2, rtol=5e-2), "fused: mismatch vs f32 reference"

    # Also exercise the weight-streaming fallback path (used automatically when
    # resident weights would exceed ~half of physical VMEM, e.g. on v7x).
    out_s = jax.block_until_ready(mlp_forward(x, params, force_streaming=True))
    assert out_s.shape == (batch, num_classes)
    assert jnp.allclose(out_s, ref_bf16, atol=1e-2, rtol=1e-2), "streamed: mismatch vs bf16 reference"

    print("KERNEL_OK")
</pallas_src>

<mosaic_0001>
module attributes {stable_mosaic.version = 11 : i64} {
  func.func @_mlp_kernel(%arg0: i32, %arg1: memref<8x128xbf16, #tpu.memory_space<vmem>>, %arg2: memref<128x128xbf16, #tpu.memory_space<vmem>>, %arg3: memref<1x128xf32, #tpu.memory_space<vmem>>, %arg4: memref<128x128xbf16, #tpu.memory_space<vmem>>, %arg5: memref<1x128xf32, #tpu.memory_space<vmem>>, %arg6: memref<128x128xbf16, #tpu.memory_space<vmem>>, %arg7: memref<1x128xf32, #tpu.memory_space<vmem>>, %arg8: memref<128x128xbf16, #tpu.memory_space<vmem>>, %arg9: memref<1x128xf32, #tpu.memory_space<vmem>>, %arg10: memref<128x128xbf16, #tpu.memory_space<vmem>>, %arg11: memref<1x128xf32, #tpu.memory_space<vmem>>, %arg12: memref<128x128xbf16, #tpu.memory_space<vmem>>, %arg13: memref<1x128xf32, #tpu.memory_space<vmem>>, %arg14: memref<128x128xbf16, #tpu.memory_space<vmem>>, %arg15: memref<1x128xf32, #tpu.memory_space<vmem>>, %arg16: memref<8x128xf32, #tpu.memory_space<vmem>>) attributes {dimension_semantics = [#tpu.dimension_semantics<parallel>], iteration_bounds = array<i64: 1>, scalar_prefetch = 0 : i64, scratch_operands = 0 : i64, tpu.core_type = #tpu.core_type<tc>, window_params = [{transform_indices = @transform_0, window_bounds = array<i64: 8, 128>}, {pipeline_mode = #tpu.pipeline_mode<synchronous>, transform_indices = @transform_1, window_bounds = array<i64: 128, 128>}, {pipeline_mode = #tpu.pipeline_mode<synchronous>, transform_indices = @transform_2, window_bounds = array<i64: 1, 128>}, {pipeline_mode = #tpu.pipeline_mode<synchronous>, transform_indices = @transform_3, window_bounds = array<i64: 128, 128>}, {pipeline_mode = #tpu.pipeline_mode<synchronous>, transform_indices = @transform_4, window_bounds = array<i64: 1, 128>}, {pipeline_mode = #tpu.pipeline_mode<synchronous>, transform_indices = @transform_5, window_bounds = array<i64: 128, 128>}, {pipeline_mode = #tpu.pipeline_mode<synchronous>, transform_indices = @transform_6, window_bounds = array<i64: 1, 128>}, {pipeline_mode = #tpu.pipeline_mode<synchronous>, transform_indices = @transform_7, window_bounds = array<i64: 128, 128>}, {pipeline_mode = #tpu.pipeline_mode<synchronous>, transform_indices = @transform_8, window_bounds = array<i64: 1, 128>}, {pipeline_mode = #tpu.pipeline_mode<synchronous>, transform_indices = @transform_9, window_bounds = array<i64: 128, 128>}, {pipeline_mode = #tpu.pipeline_mode<synchronous>, transform_indices = @transform_10, window_bounds = array<i64: 1, 128>}, {pipeline_mode = #tpu.pipeline_mode<synchronous>, transform_indices = @transform_11, window_bounds = array<i64: 128, 128>}, {pipeline_mode = #tpu.pipeline_mode<synchronous>, transform_indices = @transform_12, window_bounds = array<i64: 1, 128>}, {pipeline_mode = #tpu.pipeline_mode<synchronous>, transform_indices = @transform_13, window_bounds = array<i64: 128, 128>}, {pipeline_mode = #tpu.pipeline_mode<synchronous>, transform_indices = @transform_14, window_bounds = array<i64: 1, 128>}, {transform_indices = @transform_15, window_bounds = array<i64: 8, 128>}]} {
    %c0 = arith.constant 0 : index
    %c0_0 = arith.constant 0 : index
    %0 = vector.load %arg1[%c0, %c0_0] : memref<8x128xbf16, #tpu.memory_space<vmem>>, vector<8x128xbf16>
    %c0_1 = arith.constant 0 : index
    %c0_2 = arith.constant 0 : index
    %1 = vector.load %arg2[%c0_1, %c0_2] : memref<128x128xbf16, #tpu.memory_space<vmem>>, vector<128x128xbf16>
    %cst = arith.constant dense<0.000000e+00> : vector<8x128xf32>
    %2 = tpu.matmul %0, %1, %cst {dimension_numbers = #tpu.dot_dimension_numbers<[1], [0], [0], [1], [0, 0, 1, 1], [], []>} : vector<8x128xbf16>, vector<128x128xbf16>, vector<8x128xf32> -> vector<8x128xf32>
    %c0_3 = arith.constant 0 : index
    %c0_4 = arith.constant 0 : index
    %3 = vector.load %arg3[%c0_3, %c0_4] : memref<1x128xf32, #tpu.memory_space<vmem>>, vector<1x128xf32>
    %4 = vector.broadcast %3 : vector<1x128xf32> to vector<8x128xf32>
    %5 = arith.addf %2, %4 : vector<8x128xf32>
    %cst_5 = arith.constant 0.000000e+00 : f32
    %6 = vector.broadcast %cst_5 : f32 to vector<8x128xf32>
    %7 = arith.maximumf %5, %6 : vector<8x128xf32>
    %8 = arith.truncf %7 : vector<8x128xf32> to vector<8x128xbf16>
    %c0_6 = arith.constant 0 : index
    %c0_7 = arith.constant 0 : index
    %9 = vector.load %arg4[%c0_6, %c0_7] : memref<128x128xbf16, #tpu.memory_space<vmem>>, vector<128x128xbf16>
    %cst_8 = arith.constant dense<0.000000e+00> : vector<8x128xf32>
    %10 = tpu.matmul %8, %9, %cst_8 {dimension_numbers = #tpu.dot_dimension_numbers<[1], [0], [0], [1], [0, 0, 1, 1], [], []>} : vector<8x128xbf16>, vector<128x128xbf16>, vector<8x128xf32> -> vector<8x128xf32>
    %c0_9 = arith.constant 0 : index
    %c0_10 = arith.constant 0 : index
    %11 = vector.load %arg5[%c0_9, %c0_10] : memref<1x128xf32, #tpu.memory_space<vmem>>, vector<1x128xf32>
    %12 = vector.broadcast %11 : vector<1x128xf32> to vector<8x128xf32>
    %13 = arith.addf %10, %12 : vector<8x128xf32>
    %cst_11 = arith.constant 0.000000e+00 : f32
    %14 = vector.broadcast %cst_11 : f32 to vector<8x128xf32>
    %15 = arith.maximumf %13, %14 : vector<8x128xf32>
    %16 = arith.truncf %15 : vector<8x128xf32> to vector<8x128xbf16>
    %c0_12 = arith.constant 0 : index
    %c0_13 = arith.constant 0 : index
    %17 = vector.load %arg6[%c0_12, %c0_13] : memref<128x128xbf16, #tpu.memory_space<vmem>>, vector<128x128xbf16>
    %cst_14 = arith.constant dense<0.000000e+00> : vector<8x128xf32>
    %18 = tpu.matmul %16, %17, %cst_14 {dimension_numbers = #tpu.dot_dimension_numbers<[1], [0], [0], [1], [0, 0, 1, 1], [], []>} : vector<8x128xbf16>, vector<128x128xbf16>, vector<8x128xf32> -> vector<8x128xf32>
    %c0_15 = arith.constant 0 : index
    %c0_16 = arith.constant 0 : index
    %19 = vector.load %arg7[%c0_15, %c0_16] : memref<1x128xf32, #tpu.memory_space<vmem>>, vector<1x128xf32>
    %20 = vector.broadcast %19 : vector<1x128xf32> to vector<8x128xf32>
    %21 = arith.addf %18, %20 : vector<8x128xf32>
    %cst_17 = arith.constant 0.000000e+00 : f32
    %22 = vector.broadcast %cst_17 : f32 to vector<8x128xf32>
    %23 = arith.maximumf %21, %22 : vector<8x128xf32>
    %24 = arith.truncf %23 : vector<8x128xf32> to vector<8x128xbf16>
    %c0_18 = arith.constant 0 : index
    %c0_19 = arith.constant 0 : index
    %25 = vector.load %arg8[%c0_18, %c0_19] : memref<128x128xbf16, #tpu.memory_space<vmem>>, vector<128x128xbf16>
    %cst_20 = arith.constant dense<0.000000e+00> : vector<8x128xf32>
    %26 = tpu.matmul %24, %25, %cst_20 {dimension_numbers = #tpu.dot_dimension_numbers<[1], [0], [0], [1], [0, 0, 1, 1], [], []>} : vector<8x128xbf16>, vector<128x128xbf16>, vector<8x128xf32> -> vector<8x128xf32>
    %c0_21 = arith.constant 0 : index
    %c0_22 = arith.constant 0 : index
    %27 = vector.load %arg9[%c0_21, %c0_22] : memref<1x128xf32, #tpu.memory_space<vmem>>, vector<1x128xf32>
    %28 = vector.broadcast %27 : vector<1x128xf32> to vector<8x128xf32>
    %29 = arith.addf %26, %28 : vector<8x128xf32>
    %cst_23 = arith.constant 0.000000e+00 : f32
    %30 = vector.broadcast %cst_23 : f32 to vector<8x128xf32>
    %31 = arith.maximumf %29, %30 : vector<8x128xf32>
    %32 = arith.truncf %31 : vector<8x128xf32> to vector<8x128xbf16>
    %c0_24 = arith.constant 0 : index
    %c0_25 = arith.constant 0 : index
    %33 = vector.load %arg10[%c0_24, %c0_25] : memref<128x128xbf16, #tpu.memory_space<vmem>>, vector<128x128xbf16>
    %cst_26 = arith.constant dense<0.000000e+00> : vector<8x128xf32>
    %34 = tpu.matmul %32, %33, %cst_26 {dimension_numbers = #tpu.dot_dimension_numbers<[1], [0], [0], [1], [0, 0, 1, 1], [], []>} : vector<8x128xbf16>, vector<128x128xbf16>, vector<8x128xf32> -> vector<8x128xf32>
    %c0_27 = arith.constant 0 : index
    %c0_28 = arith.constant 0 : index
    %35 = vector.load %arg11[%c0_27, %c0_28] : memref<1x128xf32, #tpu.memory_space<vmem>>, vector<1x128xf32>
    %36 = vector.broadcast %35 : vector<1x128xf32> to vector<8x128xf32>
    %37 = arith.addf %34, %36 : vector<8x128xf32>
    %cst_29 = arith.constant 0.000000e+00 : f32
    %38 = vector.broadcast %cst_29 : f32 to vector<8x128xf32>
    %39 = arith.maximumf %37, %38 : vector<8x128xf32>
    %40 = arith.truncf %39 : vector<8x128xf32> to vector<8x128xbf16>
    %c0_30 = arith.constant 0 : index
    %c0_31 = arith.constant 0 : index
    %41 = vector.load %arg12[%c0_30, %c0_31] : memref<128x128xbf16, #tpu.memory_space<vmem>>, vector<128x128xbf16>
    %cst_32 = arith.constant dense<0.000000e+00> : vector<8x128xf32>
    %42 = tpu.matmul %40, %41, %cst_32 {dimension_numbers = #tpu.dot_dimension_numbers<[1], [0], [0], [1], [0, 0, 1, 1], [], []>} : vector<8x128xbf16>, vector<128x128xbf16>, vector<8x128xf32> -> vector<8x128xf32>
    %c0_33 = arith.constant 0 : index
    %c0_34 = arith.constant 0 : index
    %43 = vector.load %arg13[%c0_33, %c0_34] : memref<1x128xf32, #tpu.memory_space<vmem>>, vector<1x128xf32>
    %44 = vector.broadcast %43 : vector<1x128xf32> to vector<8x128xf32>
    %45 = arith.addf %42, %44 : vector<8x128xf32>
    %cst_35 = arith.constant 0.000000e+00 : f32
    %46 = vector.broadcast %cst_35 : f32 to vector<8x128xf32>
    %47 = arith.maximumf %45, %46 : vector<8x128xf32>
    %48 = arith.truncf %47 : vector<8x128xf32> to vector<8x128xbf16>
    %c0_36 = arith.constant 0 : index
    %c0_37 = arith.constant 0 : index
    %49 = vector.load %arg14[%c0_36, %c0_37] : memref<128x128xbf16, #tpu.memory_space<vmem>>, vector<128x128xbf16>
    %cst_38 = arith.constant dense<0.000000e+00> : vector<8x128xf32>
    %50 = tpu.matmul %48, %49, %cst_38 {dimension_numbers = #tpu.dot_dimension_numbers<[1], [0], [0], [1], [0, 0, 1, 1], [], []>} : vector<8x128xbf16>, vector<128x128xbf16>, vector<8x128xf32> -> vector<8x128xf32>
    %c0_39 = arith.constant 0 : index
    %c0_40 = arith.constant 0 : index
    %51 = vector.load %arg15[%c0_39, %c0_40] : memref<1x128xf32, #tpu.memory_space<vmem>>, vector<1x128xf32>
    %52 = vector.broadcast %51 : vector<1x128xf32> to vector<8x128xf32>
    %53 = arith.addf %50, %52 : vector<8x128xf32>
    %c0_41 = arith.constant 0 : index
    %c0_42 = arith.constant 0 : index
    %54 = vector.load %arg16[%c0_41, %c0_42] : memref<8x128xf32, #tpu.memory_space<vmem>>, vector<8x128xf32>
    tpu.vector_store %arg16[%c0_41, %c0_42], %53 {strides = array<i32>} : memref<8x128xf32, #tpu.memory_space<vmem>>, vector<8x128xf32>,
    return
  }
  func.func @transform_0(%arg0: i32) -> (i32, i32) {
    %c0_i32 = arith.constant 0 : i32
    %c0_i32_0 = arith.constant 0 : i32
    return %arg0, %c0_i32 : i32, i32
  }
  func.func @transform_1(%arg0: i32) -> (i32, i32) {
    %c0_i32 = arith.constant 0 : i32
    %c0_i32_0 = arith.constant 0 : i32
    %c0_i32_1 = arith.constant 0 : i32
    return %c0_i32, %c0_i32_0 : i32, i32
  }
  func.func @transform_2(%arg0: i32) -> (i32, i32) {
    %c0_i32 = arith.constant 0 : i32
    %c0_i32_0 = arith.constant 0 : i32
    %c0_i32_1 = arith.constant 0 : i32
    return %c0_i32, %c0_i32_0 : i32, i32
  }
  func.func @transform_3(%arg0: i32) -> (i32, i32) {
    %c0_i32 = arith.constant 0 : i32
    %c0_i32_0 = arith.constant 0 : i32
    %c0_i32_1 = arith.constant 0 : i32
    return %c0_i32, %c0_i32_0 : i32, i32
  }
  func.func @transform_4(%arg0: i32) -> (i32, i32) {
    %c0_i32 = arith.constant 0 : i32
    %c0_i32_0 = arith.constant 0 : i32
    %c0_i32_1 = arith.constant 0 : i32
    return %c0_i32, %c0_i32_0 : i32, i32
  }
  func.func @transform_5(%arg0: i32) -> (i32, i32) {
    %c0_i32 = arith.constant 0 : i32
    %c0_i32_0 = arith.constant 0 : i32
    %c0_i32_1 = arith.constant 0 : i32
    return %c0_i32, %c0_i32_0 : i32, i32
  }
  func.func @transform_6(%arg0: i32) -> (i32, i32) {
    %c0_i32 = arith.constant 0 : i32
    %c0_i32_0 = arith.constant 0 : i32
    %c0_i32_1 = arith.constant 0 : i32
    return %c0_i32, %c0_i32_0 : i32, i32
  }
  func.func @transform_7(%arg0: i32) -> (i32, i32) {
    %c0_i32 = arith.constant 0 : i32
    %c0_i32_0 = arith.constant 0 : i32
    %c0_i32_1 = arith.constant 0 : i32
    return %c0_i32, %c0_i32_0 : i32, i32
  }
  func.func @transform_8(%arg0: i32) -> (i32, i32) {
    %c0_i32 = arith.constant 0 : i32
    %c0_i32_0 = arith.constant 0 : i32
    %c0_i32_1 = arith.constant 0 : i32
    return %c0_i32, %c0_i32_0 : i32, i32
  }
  func.func @transform_9(%arg0: i32) -> (i32, i32) {
    %c0_i32 = arith.constant 0 : i32
    %c0_i32_0 = arith.constant 0 : i32
    %c0_i32_1 = arith.constant 0 : i32
    return %c0_i32, %c0_i32_0 : i32, i32
  }
  func.func @transform_10(%arg0: i32) -> (i32, i32) {
    %c0_i32 = arith.constant 0 : i32
    %c0_i32_0 = arith.constant 0 : i32
    %c0_i32_1 = arith.constant 0 : i32
    return %c0_i32, %c0_i32_0 : i32, i32
  }
  func.func @transform_11(%arg0: i32) -> (i32, i32) {
    %c0_i32 = arith.constant 0 : i32
    %c0_i32_0 = arith.constant 0 : i32
    %c0_i32_1 = arith.constant 0 : i32
    return %c0_i32, %c0_i32_0 : i32, i32
  }
  func.func @transform_12(%arg0: i32) -> (i32, i32) {
    %c0_i32 = arith.constant 0 : i32
    %c0_i32_0 = arith.constant 0 : i32
    %c0_i32_1 = arith.constant 0 : i32
    return %c0_i32, %c0_i32_0 : i32, i32
  }
  func.func @transform_13(%arg0: i32) -> (i32, i32) {
    %c0_i32 = arith.constant 0 : i32
    %c0_i32_0 = arith.constant 0 : i32
    %c0_i32_1 = arith.constant 0 : i32
    return %c0_i32, %c0_i32_0 : i32, i32
  }
  func.func @transform_14(%arg0: i32) -> (i32, i32) {
    %c0_i32 = arith.constant 0 : i32
    %c0_i32_0 = arith.constant 0 : i32
    %c0_i32_1 = arith.constant 0 : i32
    return %c0_i32, %c0_i32_0 : i32, i32
  }
  func.func @transform_15(%arg0: i32) -> (i32, i32) {
    %c0_i32 = arith.constant 0 : i32
    %c0_i32_0 = arith.constant 0 : i32
    return %arg0, %c0_i32 : i32, i32
  }
}

module attributes {stable_mosaic.version = 11 : i64} {
  func.func @_mlp_kernel(%arg0: i32, %arg1: memref<8x128xbf16, #tpu.memory_space<vmem>>, %arg2: memref<128x128xbf16, #tpu.memory_space<vmem>>, %arg3: memref<1x128xf32, #tpu.memory_space<vmem>>, %arg4: memref<128x128xbf16, #tpu.memory_space<vmem>>, %arg5: memref<1x128xf32, #tpu.memory_space<vmem>>, %arg6: memref<128x128xbf16, #tpu.memory_space<vmem>>, %arg7: memref<1x128xf32, #tpu.memory_space<vmem>>, %arg8: memref<128x128xbf16, #tpu.memory_space<vmem>>, %arg9: memref<1x128xf32, #tpu.memory_space<vmem>>, %arg10: memref<128x128xbf16, #tpu.memory_space<vmem>>, %arg11: memref<1x128xf32, #tpu.memory_space<vmem>>, %arg12: memref<128x128xbf16, #tpu.memory_space<vmem>>, %arg13: memref<1x128xf32, #tpu.memory_space<vmem>>, %arg14: memref<128x128xbf16, #tpu.memory_space<vmem>>, %arg15: memref<1x128xf32, #tpu.memory_space<vmem>>, %arg16: memref<8x128xf32, #tpu.memory_space<vmem>>) attributes {dimension_semantics = [#tpu.dimension_semantics<parallel>], iteration_bounds = array<i64: 1>, scalar_prefetch = 0 : i64, scratch_operands = 0 : i64, tpu.core_type = #tpu.core_type<tc>, window_params = [{transform_indices = @transform_0, window_bounds = array<i64: 8, 128>}, {pipeline_mode = #tpu.pipeline_mode<synchronous>, transform_indices = @transform_1, window_bounds = array<i64: 128, 128>}, {pipeline_mode = #tpu.pipeline_mode<synchronous>, transform_indices = @transform_2, window_bounds = array<i64: 1, 128>}, {pipeline_mode = #tpu.pipeline_mode<synchronous>, transform_indices = @transform_3, window_bounds = array<i64: 128, 128>}, {pipeline_mode = #tpu.pipeline_mode<synchronous>, transform_indices = @transform_4, window_bounds = array<i64: 1, 128>}, {pipeline_mode = #tpu.pipeline_mode<synchronous>, transform_indices = @transform_5, window_bounds = array<i64: 128, 128>}, {pipeline_mode = #tpu.pipeline_mode<synchronous>, transform_indices = @transform_6, window_bounds = array<i64: 1, 128>}, {pipeline_mode = #tpu.pipeline_mode<synchronous>, transform_indices = @transform_7, window_bounds = array<i64: 128, 128>}, {pipeline_mode = #tpu.pipeline_mode<synchronous>, transform_indices = @transform_8, window_bounds = array<i64: 1, 128>}, {pipeline_mode = #tpu.pipeline_mode<synchronous>, transform_indices = @transform_9, window_bounds = array<i64: 128, 128>}, {pipeline_mode = #tpu.pipeline_mode<synchronous>, transform_indices = @transform_10, window_bounds = array<i64: 1, 128>}, {pipeline_mode = #tpu.pipeline_mode<synchronous>, transform_indices = @transform_11, window_bounds = array<i64: 128, 128>}, {pipeline_mode = #tpu.pipeline_mode<synchronous>, transform_indices = @transform_12, window_bounds = array<i64: 1, 128>}, {pipeline_mode = #tpu.pipeline_mode<synchronous>, transform_indices = @transform_13, window_bounds = array<i64: 128, 128>}, {pipeline_mode = #tpu.pipeline_mode<synchronous>, transform_indices = @transform_14, window_bounds = array<i64: 1, 128>}, {transform_indices = @transform_15, window_bounds = array<i64: 8, 128>}]} {
    %c0 = arith.constant 0 : index
    %c0_0 = arith.constant 0 : index
    %0 = vector.load %arg1[%c0, %c0_0] : memref<8x128xbf16, #tpu.memory_space<vmem>>, vector<8x128xbf16>
    %c0_1 = arith.constant 0 : index
    %c0_2 = arith.constant 0 : index
    %1 = vector.load %arg2[%c0_1, %c0_2] : memref<128x128xbf16, #tpu.memory_space<vmem>>, vector<128x128xbf16>
    %cst = arith.constant dense<0.000000e+00> : vector<8x128xf32>
    %2 = tpu.matmul %0, %1, %cst {dimension_numbers = #tpu.dot_dimension_numbers<[1], [0], [0], [1], [0, 0, 1, 1], [], []>} : vector<8x128xbf16>, vector<128x128xbf16>, vector<8x128xf32> -> vector<8x128xf32>
    %c0_3 = arith.constant 0 : index
    %c0_4 = arith.constant 0 : index
    %3 = vector.load %arg3[%c0_3, %c0_4] : memref<1x128xf32, #tpu.memory_space<vmem>>, vector<1x128xf32>
    %4 = vector.broadcast %3 : vector<1x128xf32> to vector<8x128xf32>
    %5 = arith.addf %2, %4 : vector<8x128xf32>
    %cst_5 = arith.constant 0.000000e+00 : f32
    %6 = vector.broadcast %cst_5 : f32 to vector<8x128xf32>
    %7 = arith.maximumf %5, %6 : vector<8x128xf32>
    %8 = arith.truncf %7 : vector<8x128xf32> to vector<8x128xbf16>
    %c0_6 = arith.constant 0 : index
    %c0_7 = arith.constant 0 : index
    %9 = vector.load %arg4[%c0_6, %c0_7] : memref<128x128xbf16, #tpu.memory_space<vmem>>, vector<128x128xbf16>
    %cst_8 = arith.constant dense<0.000000e+00> : vector<8x128xf32>
    %10 = tpu.matmul %8, %9, %cst_8 {dimension_numbers = #tpu.dot_dimension_numbers<[1], [0], [0], [1], [0, 0, 1, 1], [], []>} : vector<8x128xbf16>, vector<128x128xbf16>, vector<8x128xf32> -> vector<8x128xf32>
    %c0_9 = arith.constant 0 : index
    %c0_10 = arith.constant 0 : index
    %11 = vector.load %arg5[%c0_9, %c0_10] : memref<1x128xf32, #tpu.memory_space<vmem>>, vector<1x128xf32>
    %12 = vector.broadcast %11 : vector<1x128xf32> to vector<8x128xf32>
    %13 = arith.addf %10, %12 : vector<8x128xf32>
    %cst_11 = arith.constant 0.000000e+00 : f32
    %14 = vector.broadcast %cst_11 : f32 to vector<8x128xf32>
    %15 = arith.maximumf %13, %14 : vector<8x128xf32>
    %16 = arith.truncf %15 : vector<8x128xf32> to vector<8x128xbf16>
    %c0_12 = arith.constant 0 : index
    %c0_13 = arith.constant 0 : index
    %17 = vector.load %arg6[%c0_12, %c0_13] : memref<128x128xbf16, #tpu.memory_space<vmem>>, vector<128x128xbf16>
    %cst_14 = arith.constant dense<0.000000e+00> : vector<8x128xf32>
    %18 = tpu.matmul %16, %17, %cst_14 {dimension_numbers = #tpu.dot_dimension_numbers<[1], [0], [0], [1], [0, 0, 1, 1], [], []>} : vector<8x128xbf16>, vector<128x128xbf16>, vector<8x128xf32> -> vector<8x128xf32>
    %c0_15 = arith.constant 0 : index
    %c0_16 = arith.constant 0 : index
    %19 = vector.load %arg7[%c0_15, %c0_16] : memref<1x128xf32, #tpu.memory_space<vmem>>, vector<1x128xf32>
    %20 = vector.broadcast %19 : vector<1x128xf32> to vector<8x128xf32>
    %21 = arith.addf %18, %20 : vector<8x128xf32>
    %cst_17 = arith.constant 0.000000e+00 : f32
    %22 = vector.broadcast %cst_17 : f32 to vector<8x128xf32>
    %23 = arith.maximumf %21, %22 : vector<8x128xf32>
    %24 = arith.truncf %23 : vector<8x128xf32> to vector<8x128xbf16>
    %c0_18 = arith.constant 0 : index
    %c0_19 = arith.constant 0 : index
    %25 = vector.load %arg8[%c0_18, %c0_19] : memref<128x128xbf16, #tpu.memory_space<vmem>>, vector<128x128xbf16>
    %cst_20 = arith.constant dense<0.000000e+00> : vector<8x128xf32>
    %26 = tpu.matmul %24, %25, %cst_20 {dimension_numbers = #tpu.dot_dimension_numbers<[1], [0], [0], [1], [0, 0, 1, 1], [], []>} : vector<8x128xbf16>, vector<128x128xbf16>, vector<8x128xf32> -> vector<8x128xf32>
    %c0_21 = arith.constant 0 : index
    %c0_22 = arith.constant 0 : index
    %27 = vector.load %arg9[%c0_21, %c0_22] : memref<1x128xf32, #tpu.memory_space<vmem>>, vector<1x128xf32>
    %28 = vector.broadcast %27 : vector<1x128xf32> to vector<8x128xf32>
    %29 = arith.addf %26, %28 : vector<8x128xf32>
    %cst_23 = arith.constant 0.000000e+00 : f32
    %30 = vector.broadcast %cst_23 : f32 to vector<8x128xf32>
    %31 = arith.maximumf %29, %30 : vector<8x128xf32>
    %32 = arith.truncf %31 : vector<8x128xf32> to vector<8x128xbf16>
    %c0_24 = arith.constant 0 : index
    %c0_25 = arith.constant 0 : index
    %33 = vector.load %arg10[%c0_24, %c0_25] : memref<128x128xbf16, #tpu.memory_space<vmem>>, vector<128x128xbf16>
    %cst_26 = arith.constant dense<0.000000e+00> : vector<8x128xf32>
    %34 = tpu.matmul %32, %33, %cst_26 {dimension_numbers = #tpu.dot_dimension_numbers<[1], [0], [0], [1], [0, 0, 1, 1], [], []>} : vector<8x128xbf16>, vector<128x128xbf16>, vector<8x128xf32> -> vector<8x128xf32>
    %c0_27 = arith.constant 0 : index
    %c0_28 = arith.constant 0 : index
    %35 = vector.load %arg11[%c0_27, %c0_28] : memref<1x128xf32, #tpu.memory_space<vmem>>, vector<1x128xf32>
    %36 = vector.broadcast %35 : vector<1x128xf32> to vector<8x128xf32>
    %37 = arith.addf %34, %36 : vector<8x128xf32>
    %cst_29 = arith.constant 0.000000e+00 : f32
    %38 = vector.broadcast %cst_29 : f32 to vector<8x128xf32>
    %39 = arith.maximumf %37, %38 : vector<8x128xf32>
    %40 = arith.truncf %39 : vector<8x128xf32> to vector<8x128xbf16>
    %c0_30 = arith.constant 0 : index
    %c0_31 = arith.constant 0 : index
    %41 = vector.load %arg12[%c0_30, %c0_31] : memref<128x128xbf16, #tpu.memory_space<vmem>>, vector<128x128xbf16>
    %cst_32 = arith.constant dense<0.000000e+00> : vector<8x128xf32>
    %42 = tpu.matmul %40, %41, %cst_32 {dimension_numbers = #tpu.dot_dimension_numbers<[1], [0], [0], [1], [0, 0, 1, 1], [], []>} : vector<8x128xbf16>, vector<128x128xbf16>, vector<8x128xf32> -> vector<8x128xf32>
    %c0_33 = arith.constant 0 : index
    %c0_34 = arith.constant 0 : index
    %43 = vector.load %arg13[%c0_33, %c0_34] : memref<1x128xf32, #tpu.memory_space<vmem>>, vector<1x128xf32>
    %44 = vector.broadcast %43 : vector<1x128xf32> to vector<8x128xf32>
    %45 = arith.addf %42, %44 : vector<8x128xf32>
    %cst_35 = arith.constant 0.000000e+00 : f32
    %46 = vector.broadcast %cst_35 : f32 to vector<8x128xf32>
    %47 = arith.maximumf %45, %46 : vector<8x128xf32>
    %48 = arith.truncf %47 : vector<8x128xf32> to vector<8x128xbf16>
    %c0_36 = arith.constant 0 : index
    %c0_37 = arith.constant 0 : index
    %49 = vector.load %arg14[%c0_36, %c0_37] : memref<128x128xbf16, #tpu.memory_space<vmem>>, vector<128x128xbf16>
    %cst_38 = arith.constant dense<0.000000e+00> : vector<8x128xf32>
    %50 = tpu.matmul %48, %49, %cst_38 {dimension_numbers = #tpu.dot_dimension_numbers<[1], [0], [0], [1], [0, 0, 1, 1], [], []>} : vector<8x128xbf16>, vector<128x128xbf16>, vector<8x128xf32> -> vector<8x128xf32>
    %c0_39 = arith.constant 0 : index
    %c0_40 = arith.constant 0 : index
    %51 = vector.load %arg15[%c0_39, %c0_40] : memref<1x128xf32, #tpu.memory_space<vmem>>, vector<1x128xf32>
    %52 = vector.broadcast %51 : vector<1x128xf32> to vector<8x128xf32>
    %53 = arith.addf %50, %52 : vector<8x128xf32>
    %c0_41 = arith.constant 0 : index
    %c0_42 = arith.constant 0 : index
    %54 = vector.load %arg16[%c0_41, %c0_42] : memref<8x128xf32, #tpu.memory_space<vmem>>, vector<8x128xf32>
    tpu.vector_store %arg16[%c0_41, %c0_42], %53 {strides = array<i32>} : memref<8x128xf32, #tpu.memory_space<vmem>>, vector<8x128xf32>,
    return
  }
  func.func @transform_0(%arg0: i32) -> (i32, i32) {
    %c0_i32 = arith.constant 0 : i32
    %c0_i32_0 = arith.constant 0 : i32
    return %arg0, %c0_i32 : i32, i32
  }
  func.func @transform_1(%arg0: i32) -> (i32, i32) {
    %c0_i32 = arith.constant 0 : i32
    %c0_i32_0 = arith.constant 0 : i32
    %c0_i32_1 = arith.constant 0 : i32
    return %c0_i32, %c0_i32_0 : i32, i32
  }
  func.func @transform_2(%arg0: i32) -> (i32, i32) {
    %c0_i32 = arith.constant 0 : i32
    %c0_i32_0 = arith.constant 0 : i32
    %c0_i32_1 = arith.constant 0 : i32
    return %c0_i32, %c0_i32_0 : i32, i32
  }
  func.func @transform_3(%arg0: i32) -> (i32, i32) {
    %c0_i32 = arith.constant 0 : i32
    %c0_i32_0 = arith.constant 0 : i32
    %c0_i32_1 = arith.constant 0 : i32
    return %c0_i32, %c0_i32_0 : i32, i32
  }
  func.func @transform_4(%arg0: i32) -> (i32, i32) {
    %c0_i32 = arith.constant 0 : i32
    %c0_i32_0 = arith.constant 0 : i32
    %c0_i32_1 = arith.constant 0 : i32
    return %c0_i32, %c0_i32_0 : i32, i32
  }
  func.func @transform_5(%arg0: i32) -> (i32, i32) {
    %c0_i32 = arith.constant 0 : i32
    %c0_i32_0 = arith.constant 0 : i32
    %c0_i32_1 = arith.constant 0 : i32
    return %c0_i32, %c0_i32_0 : i32, i32
  }
  func.func @transform_6(%arg0: i32) -> (i32, i32) {
    %c0_i32 = arith.constant 0 : i32
    %c0_i32_0 = arith.constant 0 : i32
    %c0_i32_1 = arith.constant 0 : i32
    return %c0_i32, %c0_i32_0 : i32, i32
  }
  func.func @transform_7(%arg0: i32) -> (i32, i32) {
    %c0_i32 = arith.constant 0 : i32
    %c0_i32_0 = arith.constant 0 : i32
    %c0_i32_1 = arith.constant 0 : i32
    return %c0_i32, %c0_i32_0 : i32, i32
  }
  func.func @transform_8(%arg0: i32) -> (i32, i32) {
    %c0_i32 = arith.constant 0 : i32
    %c0_i32_0 = arith.constant 0 : i32
    %c0_i32_1 = arith.constant 0 : i32
    return %c0_i32, %c0_i32_0 : i32, i32
  }
  func.func @transform_9(%arg0: i32) -> (i32, i32) {
    %c0_i32 = arith.constant 0 : i32
    %c0_i32_0 = arith.constant 0 : i32
    %c0_i32_1 = arith.constant 0 : i32
    return %c0_i32, %c0_i32_0 : i32, i32
  }
  func.func @transform_10(%arg0: i32) -> (i32, i32) {
    %c0_i32 = arith.constant 0 : i32
    %c0_i32_0 = arith.constant 0 : i32
    %c0_i32_1 = arith.constant 0 : i32
    return %c0_i32, %c0_i32_0 : i32, i32
  }
  func.func @transform_11(%arg0: i32) -> (i32, i32) {
    %c0_i32 = arith.constant 0 : i32
    %c0_i32_0 = arith.constant 0 : i32
    %c0_i32_1 = arith.constant 0 : i32
    return %c0_i32, %c0_i32_0 : i32, i32
  }
  func.func @transform_12(%arg0: i32) -> (i32, i32) {
    %c0_i32 = arith.constant 0 : i32
    %c0_i32_0 = arith.constant 0 : i32
    %c0_i32_1 = arith.constant 0 : i32
    return %c0_i32, %c0_i32_0 : i32, i32
  }
  func.func @transform_13(%arg0: i32) -> (i32, i32) {
    %c0_i32 = arith.constant 0 : i32
    %c0_i32_0 = arith.constant 0 : i32
    %c0_i32_1 = arith.constant 0 : i32
    return %c0_i32, %c0_i32_0 : i32, i32
  }
  func.func @transform_14(%arg0: i32) -> (i32, i32) {
    %c0_i32 = arith.constant 0 : i32
    %c0_i32_0 = arith.constant 0 : i32
    %c0_i32_1 = arith.constant 0 : i32
    return %c0_i32, %c0_i32_0 : i32, i32
  }
  func.func @transform_15(%arg0: i32) -> (i32, i32) {
    %c0_i32 = arith.constant 0 : i32
    %c0_i32_0 = arith.constant 0 : i32
    return %arg0, %c0_i32 : i32, i32
  }
}

</mosaic_0001>

<bundles_post_ra>
// kernel: tpu_custom_call.1
= control target key start
LH: loop header
LB: loop body
LE: loop exit
PB: predicated region body
PF: predicated region fallthrough
CT: control target
= control target key end

     0   :  { %20 = vsyncpa [#allocation3], 0  ;;  %s1462_s0 = inlined_call_operand.hbm [shape: bf16[8,128], index: 0, kind: input, shape index: {}]   ;;  %s1463_s1 = inlined_call_operand.hbm [shape: bf16[128,128], index: 1, kind: input, shape index: {}]   ;;  %s1464_s2 = inlined_call_operand.vmem [shape: f32[1,128], index: 2, kind: input, shape index: {}]   ;;  %s1465_s3 = inlined_call_operand.hbm [shape: bf16[128,128], index: 3, kind: input, shape index: {}]   ;;  %s1466_s4 = inlined_call_operand.vmem [shape: f32[1,128], index: 4, kind: input, shape index: {}]   ;;  %s1467_s5 = inlined_call_operand.hbm [shape: bf16[128,128], index: 5, kind: input, shape index: {}]   ;;  %s1468_s6 = inlined_call_operand.vmem [shape: f32[1,128], index: 6, kind: input, shape index: {}]   ;;  %s1469_s7 = inlined_call_operand.hbm [shape: bf16[128,128], index: 7, kind: input, shape index: {}]   ;;  %s1470_s8 = inlined_call_operand.vmem [shape: f32[1,128], index: 8, kind: input, shape index: {}]   ;;  %s1471_s9 = inlined_call_operand.hbm [shape: bf16[128,128], index: 9, kind: input, shape index: {}]   ;;  %s1472_s10 = inlined_call_operand.vmem [shape: f32[1,128], index: 10, kind: input, shape index: {}]   ;;  %s1473_s11 = inlined_call_operand.hbm [shape: bf16[128,128], index: 11, kind: input, shape index: {}]   ;;  %s1474_s12 = inlined_call_operand.vmem [shape: f32[1,128], index: 12, kind: input, shape index: {}]   ;;  %s1475_s13 = inlined_call_operand.hbm [shape: bf16[128,128], index: 13, kind: input, shape index: {}]   ;;  %s1476_s14 = inlined_call_operand.vmem [shape: f32[1,128], index: 14, kind: input, shape index: {}]   ;;  %s1477_s15 = inlined_call_operand.hbm [shape: f32[8,128], index: 15, kind: output, shape index: {}]  }
   0x1   :  { %21 = vsyncpa [#allocation6], 0 }
   0x2   :  { %22 = vsyncpa [#allocation9], 0 }
   0x3   :  { %23 = vsyncpa [#allocation12], 0 }
   0x4   :  { %24 = vsyncpa [#allocation15], 0  ;;  %s41_s20 = sshll.u32 %s1463_s1, 4  ;;  %s42_s20 = int_to_ptr.hbm [resolvable:$true] %s41_s20 }
   0x5   :  { %25 = vsyncpa [#allocation4], 0  ;;  %s1302_s21 = smov [#allocation5]   ;;  %s71_s25 = sshll.u32 %s1467_s5, 4  ;;  %s72_s25 = int_to_ptr.hbm [resolvable:$true] %s71_s25 }
   0x6   :  { %s43_s22 = sshll.u32 %s1302_s21, 4  ;;  %s1303_s26 = smov 64   ;;  %s44_s22 = int_to_ptr.vmem [resolvable:$true] %s43_s22 }
   0x7   :  { %s1304_s27 = smov 4   ;;  %s1305_s28 = smov [#allocation8]  }
   0x8   :  { %49 = dma.hbm_to_vmem [thread:$0]  %s42_s20, 1024, %s44_s22, [#allocation6], %s1303_s26, %s1303_s26, %s1304_s27  }
   0x9   :  { %s73_s29 = sshll.u32 %s1305_s28, 4  ;;  %s101_s16 = sshll.u32 %s1471_s9, 4  ;;  %s74_s29 = int_to_ptr.vmem [resolvable:$true] %s73_s29  ;;  %s102_s16 = int_to_ptr.hbm [resolvable:$true] %s101_s16 }
   0xa   :  { %79 = dma.hbm_to_vmem [thread:$0]  %s72_s25, 1024, %s74_s29, [#allocation9], %s1303_s26, %s1303_s26, %s1304_s27  }
   0xb   :  { %s31_s18 = sshll.u32 %s1462_s0, 4  ;;  %s1306_s19 = smov [#allocation11]   ;;  %s32_s18 = int_to_ptr.hbm [resolvable:$true] %s31_s18 }
   0xc   :  { %s103_s21 = sshll.u32 %s1306_s19, 4  ;;  %s1307_s20 = smov [#allocation2]   ;;  %s104_s21 = int_to_ptr.vmem [resolvable:$true] %s103_s21 }
   0xd   :  { %109 = dma.hbm_to_vmem [thread:$0]  %s102_s16, 1024, %s104_s21, [#allocation12], %s1303_s26, %s1303_s26, %s1304_s27  }
   0xe   :  { %s33_s9 = sshll.u32 %s1307_s20, 4  ;;  %s56_s24 = sshll.u32 %s1465_s3, 4  ;;  %s34_s9 = int_to_ptr.vmem [resolvable:$true] %s33_s9  ;;  %s57_s24 = int_to_ptr.hbm [resolvable:$true] %s56_s24 }
   0xf   :  { %36 = dma.hbm_to_vmem [thread:$0]  %s32_s18, 64, %s34_s9, [#allocation3]  }
  0x10   :  { %s86_s0 = sshll.u32 %s1469_s7, 4  ;;  %s1308_s29 = smov [#allocation7]   ;;  %s87_s0 = int_to_ptr.hbm [resolvable:$true] %s86_s0 }
  0x11   :  { %s58_s30 = sshll.u32 %s1308_s29, 4  ;;  %s1309_s1 = smov [#allocation10]   ;;  %s59_s30 = int_to_ptr.vmem [resolvable:$true] %s58_s30 }
  0x12   :  { %64 = dma.hbm_to_vmem [thread:$0]  %s57_s24, 1024, %s59_s30, [#allocation6], %s1303_s26, %s1303_s26, %s1304_s27  }
  0x13   :  { %s88_s16 = sshll.u32 %s1309_s1, 4  ;;  %s116_s3 = sshll.u32 %s1473_s11, 4  ;;  %s89_s16 = int_to_ptr.vmem [resolvable:$true] %s88_s16  ;;  %s117_s3 = int_to_ptr.hbm [resolvable:$true] %s116_s3 }
  0x14   :  { %94 = dma.hbm_to_vmem [thread:$0]  %s87_s0, 1024, %s89_s16, [#allocation9], %s1303_s26, %s1303_s26, %s1304_s27  }
  0x15   :  { %s131_s19 = sshll.u32 %s1475_s13, 4  ;;  %s1310_s21 = smov [#allocation13]   ;;  %s132_s19 = int_to_ptr.hbm [resolvable:$true] %s131_s19 }
  0x16   :  { %s118_s20 = sshll.u32 %s1310_s21, 4  ;;  %s1311_s9 = smov [#allocation14]   ;;  %s119_s20 = int_to_ptr.vmem [resolvable:$true] %s118_s20 }
  0x17   :  { %124 = dma.hbm_to_vmem [thread:$0]  %s117_s3, 1024, %s119_s20, [#allocation12], %s1303_s26, %s1303_s26, %s1304_s27  }
  0x18   :  { %s133_s11 = sshll.u32 %s1311_s9, 4  ;;  %s134_s11 = int_to_ptr.vmem [resolvable:$true] %s133_s11 }
  0x19   :  { %139 = dma.hbm_to_vmem [thread:$0]  %s132_s19, 1024, %s134_s11, [#allocation15], %s1303_s26, %s1303_s26, %s1304_s27  }
  0x1a   :  { %1290 = dma.done.wait [#allocation3], 64  }
  0x1b   :  { %1291 = vsyncadd [#allocation3], 4294967232 }
  0x1c   :  { %1292 = dma.done.wait [#allocation6], 2048  }
  0x1d   :  { %1293 = vsyncadd [#allocation6], 4294965248 }
  0x1e   :  { %1294 = dma.done.wait [#allocation9], 2048  }
  0x1f   :  { %1295 = vsyncadd [#allocation9], 4294965248 }
  0x20   :  { %1296 = dma.done.wait [#allocation12], 2048  }
  0x21   :  { %1297 = vsyncadd [#allocation12], 4294965248 }
  0x22   :  { %1298 = dma.done.wait [#allocation15], 1024  }
  0x23   :  { %1299 = vsyncadd [#allocation15], 4294966272  ;;  %v1007_v0 = vld [vmem:[#allocation5 + $0x38] sm:$0xff]  ;;  %v1006_v1 = vld [vmem:[#allocation5 + $0x30] sm:$0xff]  ;;  %s1312_s29 = smov [#allocation16]   ;;  %s762_s5 = sshll.u32 %s1477_s15, 4  ;;  %s763_s5 = int_to_ptr.hbm [resolvable:$true] %s762_s5 }
  0x24   :  { %243 = vmatpush.bf16.msra.mxu0 %v1007_v0  ;;  %v1015_v2 = vld [vmem:[#allocation7 + $0x38] sm:$0xff]  ;;  %v1005_v3 = vld [vmem:[#allocation5 + $0x28] sm:$0xff]  ;;  %v1014_v4 = vld [vmem:[#allocation7 + $0x30] sm:$0xff]  ;;  %s760_s30 = sshll.u32 %s1312_s29, 4  ;;  %s761_s30 = int_to_ptr.vmem [resolvable:$true] %s760_s30 }
  0x25   :  { %326 = vmatpush.bf16.msra.mxu1 %v1015_v2  ;;  %v1013_v5 = vld [vmem:[#allocation7 + $0x28] sm:$0xff]  ;;  %v1004_v6 = vld [vmem:[#allocation5 + $0x20] sm:$0xff]  ;;  %v1003_v8 = vld [vmem:[#allocation5 + $0x18] sm:$0xff] }
  0x26   :  { %v1012_v7 = vld [vmem:[#allocation7 + $0x20] sm:$0xff]  ;;  %v1011_v9 = vld [vmem:[#allocation7 + $0x18] sm:$0xff]  ;;  %v1002_v10 = vld [vmem:[#allocation5 + $0x10] sm:$0xff] }
  0x27   :  { %v1010_v11 = vld [vmem:[#allocation7 + $0x10] sm:$0xff]  ;;  %v1001_v12 = vld [vmem:[#allocation5 + $0x8] sm:$0xff]  ;;  %v1000_v13 = vld [vmem:[#allocation5] sm:$0xff] }
  0x28   :  { %244 = vmatpush.bf16.msra.mxu0 %v1006_v1  ;;  %v174_v14 = vld [vmem:[#allocation2] sm:$0xf]  ;;  %v1009_v15 = vld [vmem:[#allocation7 + $0x8] sm:$0xff]  ;;  %v1008_v16 = vld [vmem:[#allocation7] sm:$0xff] }
  0x29   :  { %327 = vmatpush.bf16.msra.mxu1 %v1014_v4  ;;  %v1023_v17 = vld [vmem:[#allocation8 + $0x38] sm:$0xff]  ;;  %v1022_v18 = vld [vmem:[#allocation8 + $0x30] sm:$0xff]  ;;  %v1021_v19 = vld [vmem:[#allocation8 + $0x28] sm:$0xff] }
  0x2a   :  { %409 = vmatpush.bf16.msra.mxu2 %v1023_v17  ;;  %v1020_v20 = vld [vmem:[#allocation8 + $0x20] sm:$0xff]  ;;  %v1019_v21 = vld [vmem:[#allocation8 + $0x18] sm:$0xff]  ;;  %v1018_v22 = vld [vmem:[#allocation8 + $0x10] sm:$0xff] }
  0x2b   :  { %v1067_v23 = vld [vmem:[%s1464_s2] ss:$0 sm:$0xff]  ;;  %v1017_v29 = vld [vmem:[#allocation8 + $0x8] sm:$0xff]  ;;  %v1016_v30 = vld [vmem:[#allocation8] sm:$0xff] }
  0x2c   :  { %245 = vmatpush.bf16.msra.mxu0 %v1005_v3  ;;  %v1031_v31 = vld [vmem:[#allocation10 + $0x38] sm:$0xff]  ;;  %v1030_v32 = vld [vmem:[#allocation10 + $0x30] sm:$0xff]  ;;  %v1029_v33 = vld [vmem:[#allocation10 + $0x28] sm:$0xff] }
  0x2d   :  { %328 = vmatpush.bf16.msra.mxu1 %v1013_v5  ;;  %492 = vmatpush.bf16.msra.mxu3 %v1031_v31  ;;  %v1028_v34 = vld [vmem:[#allocation10 + $0x20] sm:$0xff]  ;;  %v1027_v35 = vld [vmem:[#allocation10 + $0x18] sm:$0xff]  ;;  %v1026_v36 = vld [vmem:[#allocation10 + $0x10] sm:$0xff] }
  0x2e   :  { %410 = vmatpush.bf16.msra.mxu2 %v1022_v18  ;;  %v1068_v37 = vld [vmem:[%s1466_s4] ss:$0 sm:$0xff]  ;;  %v1025_v43 = vld [vmem:[#allocation10 + $0x8] sm:$0xff]  ;;  %v1024_v44 = vld [vmem:[#allocation10] sm:$0xff] }
  0x2f   :  { %v1039_v45 = vld [vmem:[#allocation11 + $0x38] sm:$0xff]  ;;  %v1038_v46 = vld [vmem:[#allocation11 + $0x30] sm:$0xff]  ;;  %v1037_v47 = vld [vmem:[#allocation11 + $0x28] sm:$0xff] }
  0x30   :  { %246 = vmatpush.bf16.msra.mxu0 %v1004_v6  ;;  %v1036_v48 = vld [vmem:[#allocation11 + $0x20] sm:$0xff]  ;;  %v1035_v49 = vld [vmem:[#allocation11 + $0x18] sm:$0xff]  ;;  %v1034_v50 = vld [vmem:[#allocation11 + $0x10] sm:$0xff] }
  0x31   :  { %329 = vmatpush.bf16.msra.mxu1 %v1012_v7  ;;  %493 = vmatpush.bf16.msra.mxu3 %v1030_v32  ;;  %v1069_v51 = vld [vmem:[%s1468_s6] ss:$0 sm:$0xff]  ;;  %v1033_v57 = vld [vmem:[#allocation11 + $0x8] sm:$0xff]  ;;  %v1032_v58 = vld [vmem:[#allocation11] sm:$0xff] }
  0x32   :  { %411 = vmatpush.bf16.msra.mxu2 %v1021_v19  ;;  %v1047_v59 = vld [vmem:[#allocation13 + $0x38] sm:$0xff]  ;;  %v1046_v60 = vld [vmem:[#allocation13 + $0x30] sm:$0xff]  ;;  %v1045_v61 = vld [vmem:[#allocation13 + $0x28] sm:$0xff] }
  0x33   :  { %v1044_v62 = vld [vmem:[#allocation13 + $0x20] sm:$0xff]  ;;  %v1043_v63 = vld [vmem:[#allocation13 + $0x18] sm:$0xff]  ;;  %v1042_v0 = vld [vmem:[#allocation13 + $0x10] sm:$0xff] }
  0x34   :  { %247 = vmatpush.bf16.msra.mxu0 %v1003_v8  ;;  %v1070_v1 = vld [vmem:[%s1470_s8] ss:$0 sm:$0xff]  ;;  %v1041_v7 = vld [vmem:[#allocation13 + $0x8] sm:$0xff]  ;;  %v1040_v8 = vld [vmem:[#allocation13] sm:$0xff] }
  0x35   :  { %330 = vmatpush.bf16.msra.mxu1 %v1011_v9  ;;  %494 = vmatpush.bf16.msra.mxu3 %v1029_v33  ;;  %v1055_v9 = vld [vmem:[#allocation14 + $0x38] sm:$0xff] }
  0x36   :  { %412 = vmatpush.bf16.msra.mxu2 %v1020_v20 }
  0x38   :  { %248 = vmatpush.bf16.msra.mxu0 %v1002_v10  ;;  %v1054_v10 = vld [vmem:[#allocation14 + $0x30] sm:$0xff] }
  0x39   :  { %331 = vmatpush.bf16.msra.mxu1 %v1010_v11  ;;  %495 = vmatpush.bf16.msra.mxu3 %v1028_v34  ;;  %v1053_v11 = vld [vmem:[#allocation14 + $0x28] sm:$0xff] }
  0x3a   :  { %413 = vmatpush.bf16.msra.mxu2 %v1019_v21  ;;  %v1049_v21 = vld [vmem:[#allocation14 + $0x8] sm:$0xff] }
  0x3c   :  { %249 = vmatpush.bf16.msra.mxu0 %v1001_v12  ;;  %v1052_v12 = vld [vmem:[#allocation14 + $0x20] sm:$0xff] }
  0x3d   :  { %332 = vmatpush.bf16.msra.mxu1 %v1009_v15  ;;  %496 = vmatpush.bf16.msra.mxu3 %v1027_v35  ;;  %v1071_v15 = vld [vmem:[%s1472_s10] ss:$0 sm:$0xff] }
  0x3e   :  { %414 = vmatpush.bf16.msra.mxu2 %v1018_v22  ;;  %v1048_v22 = vld [vmem:[#allocation14] sm:$0xff] }
  0x40   :  { %250 = vmatpush.bf16.msra.mxu0 %v1000_v13  ;;  %v1051_v13 = vld [vmem:[#allocation14 + $0x18] sm:$0xff] }
  0x41   :  { %333 = vmatpush.bf16.msra.mxu1 %v1008_v16  ;;  %497 = vmatpush.bf16.msra.mxu3 %v1026_v36 }
  0x42   :  { %415 = vmatpush.bf16.msra.mxu2 %v1017_v29  ;;  %v1073_v29 = vld [vmem:[%s1476_s14] ss:$0 sm:$0xff] }
  0x43   :  { %251 = vmatmul.bf16.vlgmr.msra.gmra.mxu0 %v174_v14  ;;  %v1050_v14 = vld [vmem:[#allocation14 + $0x10] sm:$0xff] }
  0x44   :  { %575 = vmatpush.bf16.msrb.mxu0 %v1039_v45 }
  0x45   :  { %498 = vmatpush.bf16.msra.mxu3 %v1025_v43  ;;  %658 = vmatpush.bf16.msrb.mxu1 %v1047_v59 }
  0x46   :  { %416 = vmatpush.bf16.msra.mxu2 %v1016_v30 }
  0x48   :  { %576 = vmatpush.bf16.msrb.mxu0 %v1038_v46 }
  0x49   :  { %499 = vmatpush.bf16.msra.mxu3 %v1024_v44  ;;  %659 = vmatpush.bf16.msrb.mxu1 %v1046_v60 }
  0x4a   :  { %741 = vmatpush.bf16.msrb.mxu2 %v1055_v9 }
  0x4c   :  { %577 = vmatpush.bf16.msrb.mxu0 %v1037_v47 }
  0x4d   :  { %660 = vmatpush.bf16.msrb.mxu1 %v1045_v61 }
  0x4e   :  { %742 = vmatpush.bf16.msrb.mxu2 %v1054_v10 }
  0x50   :  { %578 = vmatpush.bf16.msrb.mxu0 %v1036_v48 }
  0x51   :  { %661 = vmatpush.bf16.msrb.mxu1 %v1044_v62 }
  0x52   :  { %743 = vmatpush.bf16.msrb.mxu2 %v1053_v11 }
  0x54   :  { %579 = vmatpush.bf16.msrb.mxu0 %v1035_v49 }
  0x55   :  { %662 = vmatpush.bf16.msrb.mxu1 %v1043_v63 }
  0x56   :  { %744 = vmatpush.bf16.msrb.mxu2 %v1052_v12 }
  0x58   :  { %580 = vmatpush.bf16.msrb.mxu0 %v1034_v50 }
  0x59   :  { %663 = vmatpush.bf16.msrb.mxu1 %v1042_v0 }
  0x5a   :  { %745 = vmatpush.bf16.msrb.mxu2 %v1051_v13 }
  0x5c   :  { %581 = vmatpush.bf16.msrb.mxu0 %v1033_v57 }
  0x5d   :  { %664 = vmatpush.bf16.msrb.mxu1 %v1041_v7 }
  0x5e   :  { %746 = vmatpush.bf16.msrb.mxu2 %v1050_v14 }
  0x60   :  { %582 = vmatpush.bf16.msrb.mxu0 %v1032_v58 }
  0x61   :  { %665 = vmatpush.bf16.msrb.mxu1 %v1040_v8 }
  0x62   :  { %747 = vmatpush.bf16.msrb.mxu2 %v1049_v21 }
  0x66   :  { %748 = vmatpush.bf16.msrb.mxu2 %v1048_v22 }
  0xc0   :  { %v252_v24 = vpop.f32.mrf.mxu0 }
  0xc1   :  { %v253_v25 = vadd.f32 %v1067_v23, %v252_v24  ;;  %v1072_v23 = vld [vmem:[%s1474_s12] ss:$0 sm:$0xff] }
  0xc3   :  { %v256_v26 = vmax.f32 %v253_v25, 0.0 }
  0xc5   :  { %v257_v27 = vpack.c.bf16 %v256_v26, %v256_v26 }
  0xc7   :  { %334 = vmatmul.bf16.vlgmr.msra.gmra.mxu1 %v257_v27 }
  0xc8   :  { %v254_v28 = vpop.f32.mrf.mxu0 }
 0x144   :  { %v335_v38 = vpop.f32.mrf.mxu1 }
 0x145   :  { %v336_v39 = vadd.f32 %v1068_v37, %v335_v38 }
 0x147   :  { %v339_v40 = vmax.f32 %v336_v39, 0.0 }
 0x149   :  { %v340_v41 = vpack.c.bf16 %v339_v40, %v339_v40 }
 0x14b   :  { %417 = vmatmul.bf16.vlgmr.msra.gmra.mxu2 %v340_v41 }
 0x14c   :  { %v337_v42 = vpop.f32.mrf.mxu1 }
 0x1ce   :  { %v418_v52 = vpop.f32.mrf.mxu2 }
 0x1cf   :  { %v419_v53 = vadd.f32 %v1069_v51, %v418_v52 }
 0x1d1   :  { %v422_v54 = vmax.f32 %v419_v53, 0.0 }
 0x1d3   :  { %v423_v55 = vpack.c.bf16 %v422_v54, %v422_v54 }
 0x1d5   :  { %500 = vmatmul.bf16.vlgmr.msra.gmra.mxu3 %v423_v55 }
 0x1d6   :  { %v420_v56 = vpop.f32.mrf.mxu2 }
 0x258   :  { %v501_v2 = vpop.f32.mrf.mxu3 }
 0x259   :  { %v502_v3 = vadd.f32 %v1070_v1, %v501_v2 }
 0x25b   :  { %v505_v4 = vmax.f32 %v502_v3, 0.0 }
 0x25d   :  { %v506_v5 = vpack.c.bf16 %v505_v4, %v505_v4 }
 0x25f   :  { %583 = vmatmul.bf16.vlgmr.msrb.gmra.mxu0 %v506_v5 }
 0x260   :  { %v503_v6 = vpop.f32.mrf.mxu3 }
 0x2dc   :  { %v584_v16 = vpop.f32.mrf.mxu0 }
 0x2dd   :  { %v585_v17 = vadd.f32 %v1071_v15, %v584_v16 }
 0x2df   :  { %v588_v18 = vmax.f32 %v585_v17, 0.0 }
 0x2e1   :  { %v589_v19 = vpack.c.bf16 %v588_v18, %v588_v18 }
 0x2e3   :  { %666 = vmatmul.bf16.vlgmr.msrb.gmra.mxu1 %v589_v19 }
 0x2e4   :  { %v586_v20 = vpop.f32.mrf.mxu0 }
 0x360   :  { %v667_v24 = vpop.f32.mrf.mxu1 }
 0x361   :  { %v668_v25 = vadd.f32 %v1072_v23, %v667_v24 }
 0x363   :  { %v671_v26 = vmax.f32 %v668_v25, 0.0 }
 0x365   :  { %v672_v27 = vpack.c.bf16 %v671_v26, %v671_v26 }
 0x367   :  { %749 = vmatmul.bf16.vlgmr.msrb.gmra.mxu2 %v672_v27 }
 0x368   :  { %v669_v28 = vpop.f32.mrf.mxu1 }
 0x3ea   :  { %v750_v30 = vpop.f32.mrf.mxu2 }
 0x3eb   :  { %v751_v31 = vadd.f32 %v1073_v29, %v750_v30 }
 0x3ed   :  { %754 = vst [vmem:[#allocation16] sm:$0xff] %v751_v31 }
 0x3ee   :  { %765 = dma.vmem_to_hbm [thread:$0]  %s761_s30, 128, %s763_s5, [#allocation4]  }
 0x3f2   :  { %v752_v32 = vpop.f32.mrf.mxu2 }
 0x3f3   :  { %1300 = dma.done.wait [#allocation4], 128  }
 0x3f4   :  { %1301 = vsyncadd [#allocation4], 4294967168 }
 0x3f5   :  { %770 = vsyncpa [#allocation3], 1 }
 0x3f6   :  { %771 = vsyncpa [#allocation6], 1 }
 0x3f7   :  { %772 = vsyncpa [#allocation9], 1 }
 0x3f8   :  { %773 = vsyncpa [#allocation12], 1 }
 0x3f9   :  { %774 = vsyncpa [#allocation15], 1 }
 0x3fa   :  { %775 = vsyncpa [#allocation4], 1 }

// kernel: tpu_custom_call.1
= control target key start
LH: loop header
LB: loop body
LE: loop exit
PB: predicated region body
PF: predicated region fallthrough
CT: control target
= control target key end

     0   :  { %20 = vsyncpa [#allocation3], 0  ;;  %s1462_s0 = inlined_call_operand.hbm [shape: bf16[8,128], index: 0, kind: input, shape index: {}]   ;;  %s1463_s1 = inlined_call_operand.hbm [shape: bf16[128,128], index: 1, kind: input, shape index: {}]   ;;  %s1464_s2 = inlined_call_operand.vmem [shape: f32[1,128], index: 2, kind: input, shape index: {}]   ;;  %s1465_s3 = inlined_call_operand.hbm [shape: bf16[128,128], index: 3, kind: input, shape index: {}]   ;;  %s1466_s4 = inlined_call_operand.vmem [shape: f32[1,128], index: 4, kind: input, shape index: {}]   ;;  %s1467_s5 = inlined_call_operand.hbm [shape: bf16[128,128], index: 5, kind: input, shape index: {}]   ;;  %s1468_s6 = inlined_call_operand.vmem [shape: f32[1,128], index: 6, kind: input, shape index: {}]   ;;  %s1469_s7 = inlined_call_operand.hbm [shape: bf16[128,128], index: 7, kind: input, shape index: {}]   ;;  %s1470_s8 = inlined_call_operand.vmem [shape: f32[1,128], index: 8, kind: input, shape index: {}]   ;;  %s1471_s9 = inlined_call_operand.hbm [shape: bf16[128,128], index: 9, kind: input, shape index: {}]   ;;  %s1472_s10 = inlined_call_operand.vmem [shape: f32[1,128], index: 10, kind: input, shape index: {}]   ;;  %s1473_s11 = inlined_call_operand.hbm [shape: bf16[128,128], index: 11, kind: input, shape index: {}]   ;;  %s1474_s12 = inlined_call_operand.vmem [shape: f32[1,128], index: 12, kind: input, shape index: {}]   ;;  %s1475_s13 = inlined_call_operand.hbm [shape: bf16[128,128], index: 13, kind: input, shape index: {}]   ;;  %s1476_s14 = inlined_call_operand.vmem [shape: f32[1,128], index: 14, kind: input, shape index: {}]   ;;  %s1477_s15 = inlined_call_operand.hbm [shape: f32[8,128], index: 15, kind: output, shape index: {}]  }
   0x1   :  { %21 = vsyncpa [#allocation6], 0 }
   0x2   :  { %22 = vsyncpa [#allocation9], 0 }
   0x3   :  { %23 = vsyncpa [#allocation12], 0 }
   0x4   :  { %24 = vsyncpa [#allocation15], 0  ;;  %s41_s20 = sshll.u32 %s1463_s1, 4  ;;  %s42_s20 = int_to_ptr.hbm [resolvable:$true] %s41_s20 }
   0x5   :  { %25 = vsyncpa [#allocation4], 0  ;;  %s1302_s21 = smov [#allocation5]   ;;  %s71_s25 = sshll.u32 %s1467_s5, 4  ;;  %s72_s25 = int_to_ptr.hbm [resolvable:$true] %s71_s25 }
   0x6   :  { %s43_s22 = sshll.u32 %s1302_s21, 4  ;;  %s1303_s26 = smov 64   ;;  %s44_s22 = int_to_ptr.vmem [resolvable:$true] %s43_s22 }
   0x7   :  { %s1304_s27 = smov 4   ;;  %s1305_s28 = smov [#allocation8]  }
   0x8   :  { %49 = dma.hbm_to_vmem [thread:$0]  %s42_s20, 1024, %s44_s22, [#allocation6], %s1303_s26, %s1303_s26, %s1304_s27  }
   0x9   :  { %s73_s29 = sshll.u32 %s1305_s28, 4  ;;  %s101_s16 = sshll.u32 %s1471_s9, 4  ;;  %s74_s29 = int_to_ptr.vmem [resolvable:$true] %s73_s29  ;;  %s102_s16 = int_to_ptr.hbm [resolvable:$true] %s101_s16 }
   0xa   :  { %79 = dma.hbm_to_vmem [thread:$0]  %s72_s25, 1024, %s74_s29, [#allocation9], %s1303_s26, %s1303_s26, %s1304_s27  }
   0xb   :  { %s31_s18 = sshll.u32 %s1462_s0, 4  ;;  %s1306_s19 = smov [#allocation11]   ;;  %s32_s18 = int_to_ptr.hbm [resolvable:$true] %s31_s18 }
   0xc   :  { %s103_s21 = sshll.u32 %s1306_s19, 4  ;;  %s1307_s20 = smov [#allocation2]   ;;  %s104_s21 = int_to_ptr.vmem [resolvable:$true] %s103_s21 }
   0xd   :  { %109 = dma.hbm_to_vmem [thread:$0]  %s102_s16, 1024, %s104_s21, [#allocation12], %s1303_s26, %s1303_s26, %s1304_s27  }
   0xe   :  { %s33_s9 = sshll.u32 %s1307_s20, 4  ;;  %s56_s24 = sshll.u32 %s1465_s3, 4  ;;  %s34_s9 = int_to_ptr.vmem [resolvable:$true] %s33_s9  ;;  %s57_s24 = int_to_ptr.hbm [resolvable:$true] %s56_s24 }
   0xf   :  { %36 = dma.hbm_to_vmem [thread:$0]  %s32_s18, 64, %s34_s9, [#allocation3]  }
  0x10   :  { %s86_s0 = sshll.u32 %s1469_s7, 4  ;;  %s1308_s29 = smov [#allocation7]   ;;  %s87_s0 = int_to_ptr.hbm [resolvable:$true] %s86_s0 }
  0x11   :  { %s58_s30 = sshll.u32 %s1308_s29, 4  ;;  %s1309_s1 = smov [#allocation10]   ;;  %s59_s30 = int_to_ptr.vmem [resolvable:$true] %s58_s30 }
  0x12   :  { %64 = dma.hbm_to_vmem [thread:$0]  %s57_s24, 1024, %s59_s30, [#allocation6], %s1303_s26, %s1303_s26, %s1304_s27  }
  0x13   :  { %s88_s16 = sshll.u32 %s1309_s1, 4  ;;  %s116_s3 = sshll.u32 %s1473_s11, 4  ;;  %s89_s16 = int_to_ptr.vmem [resolvable:$true] %s88_s16  ;;  %s117_s3 = int_to_ptr.hbm [resolvable:$true] %s116_s3 }
  0x14   :  { %94 = dma.hbm_to_vmem [thread:$0]  %s87_s0, 1024, %s89_s16, [#allocation9], %s1303_s26, %s1303_s26, %s1304_s27  }
  0x15   :  { %s131_s19 = sshll.u32 %s1475_s13, 4  ;;  %s1310_s21 = smov [#allocation13]   ;;  %s132_s19 = int_to_ptr.hbm [resolvable:$true] %s131_s19 }
  0x16   :  { %s118_s20 = sshll.u32 %s1310_s21, 4  ;;  %s1311_s9 = smov [#allocation14]   ;;  %s119_s20 = int_to_ptr.vmem [resolvable:$true] %s118_s20 }
  0x17   :  { %124 = dma.hbm_to_vmem [thread:$0]  %s117_s3, 1024, %s119_s20, [#allocation12], %s1303_s26, %s1303_s26, %s1304_s27  }
  0x18   :  { %s133_s11 = sshll.u32 %s1311_s9, 4  ;;  %s134_s11 = int_to_ptr.vmem [resolvable:$true] %s133_s11 }
  0x19   :  { %139 = dma.hbm_to_vmem [thread:$0]  %s132_s19, 1024, %s134_s11, [#allocation15], %s1303_s26, %s1303_s26, %s1304_s27  }
  0x1a   :  { %1290 = dma.done.wait [#allocation3], 64  }
  0x1b   :  { %1291 = vsyncadd [#allocation3], 4294967232 }
  0x1c   :  { %1292 = dma.done.wait [#allocation6], 2048  }
  0x1d   :  { %1293 = vsyncadd [#allocation6], 4294965248 }
  0x1e   :  { %1294 = dma.done.wait [#allocation9], 2048  }
  0x1f   :  { %1295 = vsyncadd [#allocation9], 4294965248 }
  0x20   :  { %1296 = dma.done.wait [#allocation12], 2048  }
  0x21   :  { %1297 = vsyncadd [#allocation12], 4294965248 }
  0x22   :  { %1298 = dma.done.wait [#allocation15], 1024  }
  0x23   :  { %1299 = vsyncadd [#allocation15], 4294966272  ;;  %v1007_v0 = vld [vmem:[#allocation5 + $0x38] sm:$0xff]  ;;  %v1006_v1 = vld [vmem:[#allocation5 + $0x30] sm:$0xff]  ;;  %s1312_s29 = smov [#allocation16]   ;;  %s762_s5 = sshll.u32 %s1477_s15, 4  ;;  %s763_s5 = int_to_ptr.hbm [resolvable:$true] %s762_s5 }
  0x24   :  { %243 = vmatpush.bf16.msra.mxu0 %v1007_v0  ;;  %v1015_v2 = vld [vmem:[#allocation7 + $0x38] sm:$0xff]  ;;  %v1005_v3 = vld [vmem:[#allocation5 + $0x28] sm:$0xff]  ;;  %v1014_v4 = vld [vmem:[#allocation7 + $0x30] sm:$0xff]  ;;  %s760_s30 = sshll.u32 %s1312_s29, 4  ;;  %s761_s30 = int_to_ptr.vmem [resolvable:$true] %s760_s30 }
  0x25   :  { %326 = vmatpush.bf16.msra.mxu1 %v1015_v2  ;;  %v1013_v5 = vld [vmem:[#allocation7 + $0x28] sm:$0xff]  ;;  %v1004_v6 = vld [vmem:[#allocation5 + $0x20] sm:$0xff]  ;;  %v1003_v8 = vld [vmem:[#allocation5 + $0x18] sm:$0xff] }
  0x26   :  { %v1012_v7 = vld [vmem:[#allocation7 + $0x20] sm:$0xff]  ;;  %v1011_v9 = vld [vmem:[#allocation7 + $0x18] sm:$0xff]  ;;  %v1002_v10 = vld [vmem:[#allocation5 + $0x10] sm:$0xff] }
  0x27   :  { %v1010_v11 = vld [vmem:[#allocation7 + $0x10] sm:$0xff]  ;;  %v1001_v12 = vld [vmem:[#allocation5 + $0x8] sm:$0xff]  ;;  %v1000_v13 = vld [vmem:[#allocation5] sm:$0xff] }
  0x28   :  { %244 = vmatpush.bf16.msra.mxu0 %v1006_v1  ;;  %v174_v14 = vld [vmem:[#allocation2] sm:$0xf]  ;;  %v1009_v15 = vld [vmem:[#allocation7 + $0x8] sm:$0xff]  ;;  %v1008_v16 = vld [vmem:[#allocation7] sm:$0xff] }
  0x29   :  { %327 = vmatpush.bf16.msra.mxu1 %v1014_v4  ;;  %v1023_v17 = vld [vmem:[#allocation8 + $0x38] sm:$0xff]  ;;  %v1022_v18 = vld [vmem:[#allocation8 + $0x30] sm:$0xff]  ;;  %v1021_v19 = vld [vmem:[#allocation8 + $0x28] sm:$0xff] }
  0x2a   :  { %409 = vmatpush.bf16.msra.mxu2 %v1023_v17  ;;  %v1020_v20 = vld [vmem:[#allocation8 + $0x20] sm:$0xff]  ;;  %v1019_v21 = vld [vmem:[#allocation8 + $0x18] sm:$0xff]  ;;  %v1018_v22 = vld [vmem:[#allocation8 + $0x10] sm:$0xff] }
  0x2b   :  { %v1067_v23 = vld [vmem:[%s1464_s2] ss:$0 sm:$0xff]  ;;  %v1017_v29 = vld [vmem:[#allocation8 + $0x8] sm:$0xff]  ;;  %v1016_v30 = vld [vmem:[#allocation8] sm:$0xff] }
  0x2c   :  { %245 = vmatpush.bf16.msra.mxu0 %v1005_v3  ;;  %v1031_v31 = vld [vmem:[#allocation10 + $0x38] sm:$0xff]  ;;  %v1030_v32 = vld [vmem:[#allocation10 + $0x30] sm:$0xff]  ;;  %v1029_v33 = vld [vmem:[#allocation10 + $0x28] sm:$0xff] }
  0x2d   :  { %328 = vmatpush.bf16.msra.mxu1 %v1013_v5  ;;  %492 = vmatpush.bf16.msra.mxu3 %v1031_v31  ;;  %v1028_v34 = vld [vmem:[#allocation10 + $0x20] sm:$0xff]  ;;  %v1027_v35 = vld [vmem:[#allocation10 + $0x18] sm:$0xff]  ;;  %v1026_v36 = vld [vmem:[#allocation10 + $0x10] sm:$0xff] }
  0x2e   :  { %410 = vmatpush.bf16.msra.mxu2 %v1022_v18  ;;  %v1068_v37 = vld [vmem:[%s1466_s4] ss:$0 sm:$0xff]  ;;  %v1025_v43 = vld [vmem:[#allocation10 + $0x8] sm:$0xff]  ;;  %v1024_v44 = vld [vmem:[#allocation10] sm:$0xff] }
  0x2f   :  { %v1039_v45 = vld [vmem:[#allocation11 + $0x38] sm:$0xff]  ;;  %v1038_v46 = vld [vmem:[#allocation11 + $0x30] sm:$0xff]  ;;  %v1037_v47 = vld [vmem:[#allocation11 + $0x28] sm:$0xff] }
  0x30   :  { %246 = vmatpush.bf16.msra.mxu0 %v1004_v6  ;;  %v1036_v48 = vld [vmem:[#allocation11 + $0x20] sm:$0xff]  ;;  %v1035_v49 = vld [vmem:[#allocation11 + $0x18] sm:$0xff]  ;;  %v1034_v50 = vld [vmem:[#allocation11 + $0x10] sm:$0xff] }
  0x31   :  { %329 = vmatpush.bf16.msra.mxu1 %v1012_v7  ;;  %493 = vmatpush.bf16.msra.mxu3 %v1030_v32  ;;  %v1069_v51 = vld [vmem:[%s1468_s6] ss:$0 sm:$0xff]  ;;  %v1033_v57 = vld [vmem:[#allocation11 + $0x8] sm:$0xff]  ;;  %v1032_v58 = vld [vmem:[#allocation11] sm:$0xff] }
  0x32   :  { %411 = vmatpush.bf16.msra.mxu2 %v1021_v19  ;;  %v1047_v59 = vld [vmem:[#allocation13 + $0x38] sm:$0xff]  ;;  %v1046_v60 = vld [vmem:[#allocation13 + $0x30] sm:$0xff]  ;;  %v1045_v61 = vld [vmem:[#allocation13 + $0x28] sm:$0xff] }
  0x33   :  { %v1044_v62 = vld [vmem:[#allocation13 + $0x20] sm:$0xff]  ;;  %v1043_v63 = vld [vmem:[#allocation13 + $0x18] sm:$0xff]  ;;  %v1042_v0 = vld [vmem:[#allocation13 + $0x10] sm:$0xff] }
  0x34   :  { %247 = vmatpush.bf16.msra.mxu0 %v1003_v8  ;;  %v1070_v1 = vld [vmem:[%s1470_s8] ss:$0 sm:$0xff]  ;;  %v1041_v7 = vld [vmem:[#allocation13 + $0x8] sm:$0xff]  ;;  %v1040_v8 = vld [vmem:[#allocation13] sm:$0xff] }
  0x35   :  { %330 = vmatpush.bf16.msra.mxu1 %v1011_v9  ;;  %494 = vmatpush.bf16.msra.mxu3 %v1029_v33  ;;  %v1055_v9 = vld [vmem:[#allocation14 + $0x38] sm:$0xff] }
  0x36   :  { %412 = vmatpush.bf16.msra.mxu2 %v1020_v20 }
  0x38   :  { %248 = vmatpush.bf16.msra.mxu0 %v1002_v10  ;;  %v1054_v10 = vld [vmem:[#allocation14 + $0x30] sm:$0xff] }
  0x39   :  { %331 = vmatpush.bf16.msra.mxu1 %v1010_v11  ;;  %495 = vmatpush.bf16.msra.mxu3 %v1028_v34  ;;  %v1053_v11 = vld [vmem:[#allocation14 + $0x28] sm:$0xff] }
  0x3a   :  { %413 = vmatpush.bf16.msra.mxu2 %v1019_v21  ;;  %v1049_v21 = vld [vmem:[#allocation14 + $0x8] sm:$0xff] }
  0x3c   :  { %249 = vmatpush.bf16.msra.mxu0 %v1001_v12  ;;  %v1052_v12 = vld [vmem:[#allocation14 + $0x20] sm:$0xff] }
  0x3d   :  { %332 = vmatpush.bf16.msra.mxu1 %v1009_v15  ;;  %496 = vmatpush.bf16.msra.mxu3 %v1027_v35  ;;  %v1071_v15 = vld [vmem:[%s1472_s10] ss:$0 sm:$0xff] }
  0x3e   :  { %414 = vmatpush.bf16.msra.mxu2 %v1018_v22  ;;  %v1048_v22 = vld [vmem:[#allocation14] sm:$0xff] }
  0x40   :  { %250 = vmatpush.bf16.msra.mxu0 %v1000_v13  ;;  %v1051_v13 = vld [vmem:[#allocation14 + $0x18] sm:$0xff] }
  0x41   :  { %333 = vmatpush.bf16.msra.mxu1 %v1008_v16  ;;  %497 = vmatpush.bf16.msra.mxu3 %v1026_v36 }
  0x42   :  { %415 = vmatpush.bf16.msra.mxu2 %v1017_v29  ;;  %v1073_v29 = vld [vmem:[%s1476_s14] ss:$0 sm:$0xff] }
  0x43   :  { %251 = vmatmul.bf16.vlgmr.msra.gmra.mxu0 %v174_v14  ;;  %v1050_v14 = vld [vmem:[#allocation14 + $0x10] sm:$0xff] }
  0x44   :  { %575 = vmatpush.bf16.msrb.mxu0 %v1039_v45 }
  0x45   :  { %498 = vmatpush.bf16.msra.mxu3 %v1025_v43  ;;  %658 = vmatpush.bf16.msrb.mxu1 %v1047_v59 }
  0x46   :  { %416 = vmatpush.bf16.msra.mxu2 %v1016_v30 }
  0x48   :  { %576 = vmatpush.bf16.msrb.mxu0 %v1038_v46 }
  0x49   :  { %499 = vmatpush.bf16.msra.mxu3 %v1024_v44  ;;  %659 = vmatpush.bf16.msrb.mxu1 %v1046_v60 }
  0x4a   :  { %741 = vmatpush.bf16.msrb.mxu2 %v1055_v9 }
  0x4c   :  { %577 = vmatpush.bf16.msrb.mxu0 %v1037_v47 }
  0x4d   :  { %660 = vmatpush.bf16.msrb.mxu1 %v1045_v61 }
  0x4e   :  { %742 = vmatpush.bf16.msrb.mxu2 %v1054_v10 }
  0x50   :  { %578 = vmatpush.bf16.msrb.mxu0 %v1036_v48 }
  0x51   :  { %661 = vmatpush.bf16.msrb.mxu1 %v1044_v62 }
  0x52   :  { %743 = vmatpush.bf16.msrb.mxu2 %v1053_v11 }
  0x54   :  { %579 = vmatpush.bf16.msrb.mxu0 %v1035_v49 }
  0x55   :  { %662 = vmatpush.bf16.msrb.mxu1 %v1043_v63 }
  0x56   :  { %744 = vmatpush.bf16.msrb.mxu2 %v1052_v12 }
  0x58   :  { %580 = vmatpush.bf16.msrb.mxu0 %v1034_v50 }
  0x59   :  { %663 = vmatpush.bf16.msrb.mxu1 %v1042_v0 }
  0x5a   :  { %745 = vmatpush.bf16.msrb.mxu2 %v1051_v13 }
  0x5c   :  { %581 = vmatpush.bf16.msrb.mxu0 %v1033_v57 }
  0x5d   :  { %664 = vmatpush.bf16.msrb.mxu1 %v1041_v7 }
  0x5e   :  { %746 = vmatpush.bf16.msrb.mxu2 %v1050_v14 }
  0x60   :  { %582 = vmatpush.bf16.msrb.mxu0 %v1032_v58 }
  0x61   :  { %665 = vmatpush.bf16.msrb.mxu1 %v1040_v8 }
  0x62   :  { %747 = vmatpush.bf16.msrb.mxu2 %v1049_v21 }
  0x66   :  { %748 = vmatpush.bf16.msrb.mxu2 %v1048_v22 }
  0xc0   :  { %v252_v24 = vpop.f32.mrf.mxu0 }
  0xc1   :  { %v253_v25 = vadd.f32 %v1067_v23, %v252_v24  ;;  %v1072_v23 = vld [vmem:[%s1474_s12] ss:$0 sm:$0xff] }
  0xc3   :  { %v256_v26 = vmax.f32 %v253_v25, 0.0 }
  0xc5   :  { %v257_v27 = vpack.c.bf16 %v256_v26, %v256_v26 }
  0xc7   :  { %334 = vmatmul.bf16.vlgmr.msra.gmra.mxu1 %v257_v27 }
  0xc8   :  { %v254_v28 = vpop.f32.mrf.mxu0 }
 0x144   :  { %v335_v38 = vpop.f32.mrf.mxu1 }
 0x145   :  { %v336_v39 = vadd.f32 %v1068_v37, %v335_v38 }
 0x147   :  { %v339_v40 = vmax.f32 %v336_v39, 0.0 }
 0x149   :  { %v340_v41 = vpack.c.bf16 %v339_v40, %v339_v40 }
 0x14b   :  { %417 = vmatmul.bf16.vlgmr.msra.gmra.mxu2 %v340_v41 }
 0x14c   :  { %v337_v42 = vpop.f32.mrf.mxu1 }
 0x1ce   :  { %v418_v52 = vpop.f32.mrf.mxu2 }
 0x1cf   :  { %v419_v53 = vadd.f32 %v1069_v51, %v418_v52 }
 0x1d1   :  { %v422_v54 = vmax.f32 %v419_v53, 0.0 }
 0x1d3   :  { %v423_v55 = vpack.c.bf16 %v422_v54, %v422_v54 }
 0x1d5   :  { %500 = vmatmul.bf16.vlgmr.msra.gmra.mxu3 %v423_v55 }
 0x1d6   :  { %v420_v56 = vpop.f32.mrf.mxu2 }
 0x258   :  { %v501_v2 = vpop.f32.mrf.mxu3 }
 0x259   :  { %v502_v3 = vadd.f32 %v1070_v1, %v501_v2 }
 0x25b   :  { %v505_v4 = vmax.f32 %v502_v3, 0.0 }
 0x25d   :  { %v506_v5 = vpack.c.bf16 %v505_v4, %v505_v4 }
 0x25f   :  { %583 = vmatmul.bf16.vlgmr.msrb.gmra.mxu0 %v506_v5 }
 0x260   :  { %v503_v6 = vpop.f32.mrf.mxu3 }
 0x2dc   :  { %v584_v16 = vpop.f32.mrf.mxu0 }
 0x2dd   :  { %v585_v17 = vadd.f32 %v1071_v15, %v584_v16 }
 0x2df   :  { %v588_v18 = vmax.f32 %v585_v17, 0.0 }
 0x2e1   :  { %v589_v19 = vpack.c.bf16 %v588_v18, %v588_v18 }
 0x2e3   :  { %666 = vmatmul.bf16.vlgmr.msrb.gmra.mxu1 %v589_v19 }
 0x2e4   :  { %v586_v20 = vpop.f32.mrf.mxu0 }
 0x360   :  { %v667_v24 = vpop.f32.mrf.mxu1 }
 0x361   :  { %v668_v25 = vadd.f32 %v1072_v23, %v667_v24 }
 0x363   :  { %v671_v26 = vmax.f32 %v668_v25, 0.0 }
 0x365   :  { %v672_v27 = vpack.c.bf16 %v671_v26, %v671_v26 }
 0x367   :  { %749 = vmatmul.bf16.vlgmr.msrb.gmra.mxu2 %v672_v27 }
 0x368   :  { %v669_v28 = vpop.f32.mrf.mxu1 }
 0x3ea   :  { %v750_v30 = vpop.f32.mrf.mxu2 }
 0x3eb   :  { %v751_v31 = vadd.f32 %v1073_v29, %v750_v30 }
 0x3ed   :  { %754 = vst [vmem:[#allocation16] sm:$0xff] %v751_v31 }
 0x3ee   :  { %765 = dma.vmem_to_hbm [thread:$0]  %s761_s30, 128, %s763_s5, [#allocation4]  }
 0x3f2   :  { %v752_v32 = vpop.f32.mrf.mxu2 }
 0x3f3   :  { %1300 = dma.done.wait [#allocation4], 128  }
 0x3f4   :  { %1301 = vsyncadd [#allocation4], 4294967168 }
 0x3f5   :  { %770 = vsyncpa [#allocation3], 1 }
 0x3f6   :  { %771 = vsyncpa [#allocation6], 1 }
 0x3f7   :  { %772 = vsyncpa [#allocation9], 1 }
 0x3f8   :  { %773 = vsyncpa [#allocation12], 1 }
 0x3f9   :  { %774 = vsyncpa [#allocation15], 1 }
 0x3fa   :  { %775 = vsyncpa [#allocation4], 1 }

</bundles_post_ra>
